<compile_context>
chip_gen: v5e
topology: v5e:2x2
jax: 0.10.0
libtpu: 0.0.40
codegen_flags: <defaults>
</compile_context>

<pallas_src>
import jax
import jax.numpy as jnp
from jax.experimental import pallas as pl
from jax.experimental.pallas import tpu as pltpu

_LANES = 128
_MAX_TILE_ROWS = 2048  # (2048, 128) f32 = 1 MiB per big input per block.


def _make_kernel(tile_rows, valid_rows, has_tail):
    """Builds the per-block kernel. `valid_rows`/`tile_rows` are static."""

    def kernel(pred_ref, tgt_ref, mask_ref, num_ref, den_ref):
        p = pred_ref[...].astype(jnp.float32)
        t = tgt_ref[...].astype(jnp.float32)
        sel = mask_ref[...] != 0
        if has_tail:
            # Last grid block extends past the real rows; those rows hold
            # undefined data -> mask them out via a sublane iota.
            i = pl.program_id(0)
            row = jax.lax.broadcasted_iota(jnp.int32, sel.shape, 0)
            sel = jnp.logical_and(sel, (i * tile_rows + row) < valid_rows)
        c = jnp.cos(p - t)
        cm = jnp.where(sel, c, 0.0)          # where() kills any NaN garbage
        m = sel.astype(jnp.float32)
        # (tile_rows, 128) -> (tile_rows//8, 8, 128), reduce leading axis with
        # pure VPU vreg adds down to a lane-dense (8, 128) partial.
        num_ref[0] = jnp.sum(cm.reshape(tile_rows // 8, 8, _LANES), axis=0)
        den_ref[0] = jnp.sum(m.reshape(tile_rows // 8, 8, _LANES), axis=0)

    return kernel


def masked_cosine_loss(pred, tgt, mask, *, max_tile_rows=_MAX_TILE_ROWS):
    """Masked cosine loss; the heavy reduction runs in a Pallas TPU kernel."""
    assert max_tile_rows % 32 == 0  # int8 mask blocks want 32-row alignment

    pred_f = jnp.ravel(pred)                          # keep native dtype in HBM
    tgt_f = jnp.ravel(tgt)
    mask_i = (jnp.ravel(mask) != 0).astype(jnp.int8)  # 1 byte/elem in HBM

    n = pred_f.shape[0]
    # Small pad to an (8*128)-element multiple only when required (most shapes
    # avoid it). Block-multiple padding is never done; the tail block is
    # handled in-kernel instead.
    # TODO(synk): a fully pad-free path for n % 1024 != 0 would need manual DMA.
    pad = (-n) % (8 * _LANES)
    if pad:
        pred_f = jnp.pad(pred_f, (0, pad))
        tgt_f = jnp.pad(tgt_f, (0, pad))
        mask_i = jnp.pad(mask_i, (0, pad))            # padded mask = 0 -> excluded
    rows = (n + pad) // _LANES                        # always a multiple of 8

    tile_rows = min(max_tile_rows, rows)              # full array if it fits
    num_blocks = pl.cdiv(rows, tile_rows)
    has_tail = (num_blocks * tile_rows != rows)

    pred2 = pred_f.reshape(rows, _LANES)
    tgt2 = tgt_f.reshape(rows, _LANES)
    mask2 = mask_i.reshape(rows, _LANES)

    in_tile = pl.BlockSpec((tile_rows, _LANES), lambda i: (i, 0))
    out_tile = pl.BlockSpec((1, 8, _LANES), lambda i: (i, 0, 0))

    num_part, den_part = pl.pallas_call(
        _make_kernel(tile_rows, rows, has_tail),
        out_shape=(
            jax.ShapeDtypeStruct((num_blocks, 8, _LANES), jnp.float32),
            jax.ShapeDtypeStruct((num_blocks, 8, _LANES), jnp.float32),
        ),
        grid_spec=pltpu.PrefetchScalarGridSpec(
            num_scalar_prefetch=0,
            grid=(num_blocks,),
            in_specs=[in_tile, in_tile, in_tile],
            out_specs=[out_tile, out_tile],
        ),
        compiler_params=pltpu.CompilerParams(
            dimension_semantics=("parallel",),
        ),
    )(pred2, tgt2, mask2)

    # Tiny final reduction + divide in plain JAX (NaN if mask is all-False,
    # matching torch's mean over an empty selection).
    return jnp.sum(num_part) / jnp.sum(den_part)


if __name__ == "__main__":
    key = jax.random.PRNGKey(0)
    k1, k2, k3 = jax.random.split(key, 3)

    # Primary check: small shape consistent with "angles over batched data".
    shape = (2, 4, 16, 16)
    pred = jax.random.uniform(k1, shape, jnp.float32, -3.14159, 3.14159)
    tgt = jax.random.uniform(k2, shape, jnp.float32, -3.14159, 3.14159)
    mask = jax.random.bernoulli(k3, 0.5, shape)
    mask = mask.at[0, 0, 0, 0].set(True)  # guarantee non-empty selection

    out = jax.block_until_ready(masked_cosine_loss(pred, tgt, mask))

    m = mask.astype(jnp.float32)
    ref = jnp.sum(jnp.cos(pred - tgt) * m) / jnp.sum(m)
    assert jnp.allclose(out, ref, rtol=1e-5, atol=1e-5), (out, ref)

    # Secondary check: odd element count (exercises the small pad) plus a
    # multi-block ragged tail (exercises in-kernel tail masking), using a small
    # tile so it triggers at test scale.
    k4, k5, k6 = jax.random.split(jax.random.PRNGKey(1), 3)
    shape2 = (41, 127)  # 5207 elems -> rows=48, two 32-row blocks, tail masked
    pred2 = jax.random.uniform(k4, shape2, jnp.float32, -3.14159, 3.14159)
    tgt2 = jax.random.uniform(k5, shape2, jnp.float32, -3.14159, 3.14159)
    mask2 = jax.random.bernoulli(k6, 0.3, shape2)
    mask2 = mask2.at[0, 0].set(True)

    out2 = jax.block_until_ready(
        masked_cosine_loss(pred2, tgt2, mask2, max_tile_rows=32))
    m2 = mask2.astype(jnp.float32)
    ref2 = jnp.sum(jnp.cos(pred2 - tgt2) * m2) / jnp.sum(m2)
    assert jnp.allclose(out2, ref2, rtol=1e-5, atol=1e-5), (out2, ref2)

    print("KERNEL_OK")
</pallas_src>

<mosaic_0001>
module attributes {stable_mosaic.version = 11 : i64} {
  func.func @kernel(%arg0: i32, %arg1: memref<16x128xf32, #tpu.memory_space<vmem>>, %arg2: memref<16x128xf32, #tpu.memory_space<vmem>>, %arg3: memref<16x128xi8, #tpu.memory_space<vmem>>, %arg4: memref<1x8x128xf32, #tpu.memory_space<vmem>>, %arg5: memref<1x8x128xf32, #tpu.memory_space<vmem>>) attributes {dimension_semantics = [#tpu.dimension_semantics<parallel>], iteration_bounds = array<i64: 1>, scalar_prefetch = 0 : i64, scratch_operands = 0 : i64, tpu.core_type = #tpu.core_type<tc>, window_params = [{transform_indices = @transform_0, window_bounds = array<i64: 16, 128>}, {transform_indices = @transform_1, window_bounds = array<i64: 16, 128>}, {transform_indices = @transform_2, window_bounds = array<i64: 16, 128>}, {transform_indices = @transform_3, window_bounds = array<i64: 1, 8, 128>}, {transform_indices = @transform_4, window_bounds = array<i64: 1, 8, 128>}]} {
    %c0 = arith.constant 0 : index
    %c0_0 = arith.constant 0 : index
    %0 = vector.load %arg1[%c0, %c0_0] : memref<16x128xf32, #tpu.memory_space<vmem>>, vector<16x128xf32>
    %c0_1 = arith.constant 0 : index
    %c0_2 = arith.constant 0 : index
    %1 = vector.load %arg2[%c0_1, %c0_2] : memref<16x128xf32, #tpu.memory_space<vmem>>, vector<16x128xf32>
    %c0_3 = arith.constant 0 : index
    %c0_4 = arith.constant 0 : index
    %2 = vector.load %arg3[%c0_3, %c0_4] : memref<16x128xi8, #tpu.memory_space<vmem>>, vector<16x128xi8>
    %c0_i8 = arith.constant 0 : i8
    %3 = vector.broadcast %c0_i8 : i8 to vector<16x128xi8>
    %4 = arith.cmpi ne, %2, %3 : vector<16x128xi8>
    %5 = arith.subf %0, %1 : vector<16x128xf32>
    %6 = math.cos %5 : vector<16x128xf32>
    %cst = arith.constant 0.000000e+00 : f32
    %7 = vector.broadcast %cst : f32 to vector<16x128xf32>
    %8 = arith.select %4, %6, %7 : vector<16x128xi1>, vector<16x128xf32>
    %9 = arith.extui %4 : vector<16x128xi1> to vector<16x128xi32>
    %10 = arith.sitofp %9 : vector<16x128xi32> to vector<16x128xf32>
    %11 = vector.shape_cast %8 : vector<16x128xf32> to vector<2x8x128xf32>
    %cst_5 = arith.constant dense<0.000000e+00> : vector<8x128xf32>
    %12 = vector.multi_reduction <add>, %11, %cst_5 [0] : vector<2x8x128xf32> to vector<8x128xf32>
    %c0_6 = arith.constant 0 : index
    %c0_7 = arith.constant 0 : index
    %c0_8 = arith.constant 0 : index
    %13 = vector.load %arg4[%c0_6, %c0_7, %c0_8] : memref<1x8x128xf32, #tpu.memory_space<vmem>>, vector<1x8x128xf32>
    %14 = vector.shape_cast %13 : vector<1x8x128xf32> to vector<8x128xf32>
    %15 = vector.shape_cast %12 : vector<8x128xf32> to vector<1x8x128xf32>
    tpu.vector_store %arg4[%c0_6, %c0_7, %c0_8], %15 {strides = array<i32>} : memref<1x8x128xf32, #tpu.memory_space<vmem>>, vector<1x8x128xf32>,
    %16 = vector.shape_cast %10 : vector<16x128xf32> to vector<2x8x128xf32>
    %cst_9 = arith.constant dense<0.000000e+00> : vector<8x128xf32>
    %17 = vector.multi_reduction <add>, %16, %cst_9 [0] : vector<2x8x128xf32> to vector<8x128xf32>
    %c0_10 = arith.constant 0 : index
    %c0_11 = arith.constant 0 : index
    %c0_12 = arith.constant 0 : index
    %18 = vector.load %arg5[%c0_10, %c0_11, %c0_12] : memref<1x8x128xf32, #tpu.memory_space<vmem>>, vector<1x8x128xf32>
    %19 = vector.shape_cast %18 : vector<1x8x128xf32> to vector<8x128xf32>
    %20 = vector.shape_cast %17 : vector<8x128xf32> to vector<1x8x128xf32>
    tpu.vector_store %arg5[%c0_10, %c0_11, %c0_12], %20 {strides = array<i32>} : memref<1x8x128xf32, #tpu.memory_space<vmem>>, vector<1x8x128xf32>,
    return
  }
  func.func @transform_0(%arg0: i32) -> (i32, i32) {
    %c0_i32 = arith.constant 0 : i32
    %c0_i32_0 = arith.constant 0 : i32
    return %arg0, %c0_i32 : i32, i32
  }
  func.func @transform_1(%arg0: i32) -> (i32, i32) {
    %c0_i32 = arith.constant 0 : i32
    %c0_i32_0 = arith.constant 0 : i32
    return %arg0, %c0_i32 : i32, i32
  }
  func.func @transform_2(%arg0: i32) -> (i32, i32) {
    %c0_i32 = arith.constant 0 : i32
    %c0_i32_0 = arith.constant 0 : i32
    return %arg0, %c0_i32 : i32, i32
  }
  func.func @transform_3(%arg0: i32) -> (i32, i32, i32) {
    %c0_i32 = arith.constant 0 : i32
    %c0_i32_0 = arith.constant 0 : i32
    %c0_i32_1 = arith.constant 0 : i32
    return %arg0, %c0_i32, %c0_i32_0 : i32, i32, i32
  }
  func.func @transform_4(%arg0: i32) -> (i32, i32, i32) {
    %c0_i32 = arith.constant 0 : i32
    %c0_i32_0 = arith.constant 0 : i32
    %c0_i32_1 = arith.constant 0 : i32
    return %arg0, %c0_i32, %c0_i32_0 : i32, i32, i32
  }
}

</mosaic_0001>

<bundles_post_ra>
// kernel: tpu_custom_call.1
= control target key start
LH: loop header
LB: loop body
LE: loop exit
PB: predicated region body
PF: predicated region fallthrough
CT: control target
= control target key end

     0   :  { %10 = vsyncpa [#allocation3], 0  ;;  %s840_s0 = inlined_call_operand.hbm [shape: f32[16,128], index: 0, kind: input, shape index: {}]   ;;  %s841_s1 = inlined_call_operand.hbm [shape: f32[16,128], index: 1, kind: input, shape index: {}]   ;;  %s842_s2 = inlined_call_operand.hbm [shape: s8[16,128], index: 2, kind: input, shape index: {}]   ;;  %s843_s3 = inlined_call_operand.hbm [shape: f32[1,8,128], index: 3, kind: output, shape index: {0}]   ;;  %s844_s4 = inlined_call_operand.hbm [shape: f32[1,8,128], index: 4, kind: output, shape index: {1}]  }
   0x1   :  { %11 = vsyncpa [#allocation6], 0 }
   0x2   :  { %12 = vsyncpa [#allocation4], 0 }
   0x3   :  { %13 = vsyncpa [#allocation10], 0  ;;  %s31_s17 = sshll.u32 %s841_s1, 4  ;;  %s588_s18 = smov [#allocation5]   ;;  %s32_s17 = int_to_ptr.hbm [resolvable:$true] %s31_s17 }
   0x4   :  { %s33_s19 = sshll.u32 %s588_s18, 4  ;;  %s18_s22 = sshll.u32 %s840_s0, 4  ;;  %s34_s19 = int_to_ptr.vmem [resolvable:$true] %s33_s19  ;;  %s19_s22 = int_to_ptr.hbm [resolvable:$true] %s18_s22 }
   0x5   :  { %s589_s23 = smov 128   ;;  %s590_s24 = smov 8  }
   0x6   :  { %39 = dma.hbm_to_vmem [thread:$0]  %s32_s17, 256, %s34_s19, [#allocation6], %s589_s23, %s589_s23, %s590_s24  }
   0x7   :  { %s591_s25 = smov [#allocation2]   ;;  %s44_s29 = sshll.u32 %s842_s2, 4  ;;  %s45_s29 = int_to_ptr.hbm [resolvable:$true] %s44_s29 }
   0x8   :  { %s20_s26 = sshll.u32 %s591_s25, 4  ;;  %s592_s1 = smov [#allocation7]   ;;  %s21_s26 = int_to_ptr.vmem [resolvable:$true] %s20_s26 }
   0x9   :  { %26 = dma.hbm_to_vmem [thread:$0]  %s19_s22, 256, %s21_s26, [#allocation3], %s589_s23, %s589_s23, %s590_s24  }
   0xa   :  { %s46_s30 = sshll.u32 %s592_s1, 4  ;;  %s593_s5 = smov 32   ;;  %s47_s30 = int_to_ptr.vmem [resolvable:$true] %s46_s30 }
   0xb   :  { %s594_s6 = smov 2  }
   0xc   :  { %52 = dma.hbm_to_vmem [thread:$0]  %s45_s29, 64, %s47_s30, [#allocation6], %s593_s5, %s593_s5, %s594_s6  }
   0xd   :  { %580 = dma.done.wait [#allocation3], 256  }
   0xe   :  { %581 = vsyncadd [#allocation3], 4294967040 }
   0xf   :  { %582 = dma.done.wait [#allocation6], 320  }
  0x10   :  { %583 = vsyncadd [#allocation6], 4294966976  ;;  %v67_v0 = vld [vmem:[#allocation2] sm:$0xff]  ;;  %v68_v1 = vld [vmem:[#allocation2 + $0x8] sm:$0xff]  ;;  %v595_v27 = vmov 683565275  }
  0x11   :  { %v69_v2 = vld [vmem:[#allocation5] sm:$0xff]  ;;  %v70_v3 = vld [vmem:[#allocation5 + $0x8] sm:$0xff]  ;;  %v596_v29 = vmov 2475754826   ;;  %v597_v31 = vmov 2131351028  }
  0x12   :  { %v639_v4 = vsub.f32 %v67_v0, %v69_v2  ;;  %v641_v5 = vsub.f32 %v68_v1, %v70_v3  ;;  %v598_v33 = vmov 2102212464   ;;  %v599_v35 = vmov 920167782   ;;  %s602_s0 = smov [#allocation9]   ;;  %s419_s9 = sshll.u32 %s844_s4, 4  ;;  %s420_s9 = int_to_ptr.hbm [resolvable:$true] %s419_s9 }
  0x13   :  { %v600_v44 = vmov 1326507024   ;;  %s417_s2 = sshll.u32 %s602_s0, 4  ;;  %s604_s4 = smov [#allocation8]   ;;  %s418_s2 = int_to_ptr.vmem [resolvable:$true] %s417_s2 }
  0x14   :  { %v77_v6 = vand.u32 2147483647, %v639_v4  ;;  %v80_v7 = vand.u32 2139095040, %v639_v4  ;;  %v231_v8 = vand.u32 2147483647, %v641_v5  ;;  %v234_v9 = vand.u32 2139095040, %v641_v5 }
  0x15   :  { %s406_s10 = sshll.u32 %s604_s4, 4  ;;  %s408_s13 = sshll.u32 %s843_s3, 4  ;;  %s407_s10 = int_to_ptr.vmem [resolvable:$true] %s406_s10  ;;  %s409_s13 = int_to_ptr.hbm [resolvable:$true] %s408_s13 }
  0x16   :  { %v81_v10 = vshrl.u32 %v80_v7, 23  ;;  %v84_v11 = vand.u32 8388607, %v77_v6  ;;  %v235_v12 = vshrl.u32 %v234_v9, 23  ;;  %v238_v16 = vand.u32 8388607, %v231_v8 }
  0x18   :  { %v435_v13 = vadd.s32 4294967169, %v81_v10  ;;  %v85_v14 = vor.u32 8388608, %v84_v11  ;;  %v438_v15 = vadd.s32 4294967169, %v235_v12  ;;  %v239_v21 = vor.u32 8388608, %v238_v16 }
  0x1a   :  { %v87_v17 = vadd.s32 1, %v435_v13  ;;  %v241_v18 = vadd.s32 1, %v438_v15  ;;  %v651_v20 = vshll.u32 %v85_v14, 8  ;;  %v661_v38 = vshll.u32 %v239_v21, 8 }
  0x1c   :  { %vm88_vm0 = vcmp.gt.s32.totalorder %v87_v17, 0  ;;  %vm242_vm1 = vcmp.gt.s32.totalorder %v241_v18, 0  ;;  %v126_v37 = vand.u32 65535, %v651_v20  ;;  %v127_v42 = vshrl.u32 %v651_v20, 16 }
  0x1d   :  { %v89_v19 = vsel %vm88_vm0, %v87_v17, 0  ;;  %v243_v23 = vsel %vm242_vm1, %v241_v18, 0 }
  0x1e   :  { %v91_v22 = vand.u32 31, %v89_v19  ;;  %v653_v24 = vshrl.u32 %v89_v19, 5  ;;  %v655_v25 = vand.u32 31, %v243_v23  ;;  %v679_v55 = vshrl.u32 %v243_v23, 5 }
  0x20   :  { %v92_v26 = vsub.s32 32, %v91_v22  ;;  %v94_v28 = vshll.u32 %v595_v27, %v91_v22  ;;  %v97_v30 = vshll.u32 %v596_v29, %v91_v22  ;;  %v100_v32 = vshll.u32 %v597_v31, %v91_v22 }
  0x21   :  { %v103_v34 = vshll.u32 %v598_v33, %v91_v22  ;;  %v106_v36 = vshll.u32 %v599_v35, %v91_v22  ;;  %vm109_vm2 = vcmp.lt.s32.totalorder %v653_v24, 1  ;;  %vm112_vm3 = vcmp.lt.s32.totalorder %v653_v24, 4 }
  0x22   :  { %v95_v39 = vshrl.u32 %v596_v29, %v92_v26  ;;  %v98_v40 = vshrl.u32 %v597_v31, %v92_v26  ;;  %v101_v41 = vshrl.u32 %v598_v33, %v92_v26  ;;  %v104_v43 = vshrl.u32 %v599_v35, %v92_v26 }
  0x23   :  { %v107_v45 = vshrl.u32 %v600_v44, %v92_v26  ;;  %v670_v49 = vsub.s32 32, %v655_v25  ;;  %v93_v50 = vshrl.u32 %v595_v27, %v92_v26  ;;  %vm111_vm4 = vcmp.lt.s32.totalorder %v653_v24, 3 }
  0x24   :  { %v96_v46 = vor.u32 %v95_v39, %v94_v28  ;;  %v99_v47 = vor.u32 %v98_v40, %v97_v30  ;;  %v102_v48 = vor.u32 %v101_v41, %v100_v32  ;;  %v105_v51 = vor.u32 %v104_v43, %v103_v34 }
  0x25   :  { %v108_v52 = vor.u32 %v107_v45, %v106_v36  ;;  %vm110_vm5 = vcmp.lt.s32.totalorder %v653_v24, 2  ;;  %v248_v58 = vshll.u32 %v595_v27, %v655_v25  ;;  %v251_v59 = vshll.u32 %v596_v29, %v655_v25 }
  0x26   :  { %v117_v53 = vsel %vm109_vm2, %v96_v46, %v99_v47  ;;  %v121_v54 = vsel %vm109_vm2, %v99_v47, %v102_v48  ;;  %v118_v56 = vsel %vm112_vm3, %v105_v51, 920167782  ;;  %v114_v60 = vsel %vm112_vm3, %v102_v48, 2102212464 }
  0x27   :  { %v122_v57 = vsel %vm112_vm3, %v108_v52, 1326507024  ;;  %v119_v61 = vsel %vm111_vm4, %v102_v48, %v118_v56  ;;  %v249_v63 = vshrl.u32 %v596_v29, %v670_v49  ;;  %v113_v0 = vsel %vm109_vm2, %v93_v50, %v96_v46 }
  0x28   :  { %v123_v62 = vsel %vm111_vm4, %v105_v51, %v122_v57  ;;  %v120_v1 = vsel %vm110_vm5, %v117_v53, %v119_v61  ;;  %v252_v3 = vshrl.u32 %v597_v31, %v670_v49  ;;  %v115_v12 = vsel %vm111_vm4, %v99_v47, %v114_v60 }
  0x29   :  { %v124_v2 = vsel %vm110_vm5, %v121_v54, %v123_v62  ;;  %v150_v10 = vand.u32 65535, %v120_v1  ;;  %v151_v11 = vshrl.u32 %v120_v1, 16  ;;  %v704_v13 = vor.u32 %v249_v63, %v248_v58 }
  0x2a   :  { %v128_v7 = vand.u32 65535, %v124_v2  ;;  %v129_v9 = vshrl.u32 %v124_v2, 16  ;;  %v706_v14 = vor.u32 %v252_v3, %v251_v59  ;;  %v254_v15 = vshll.u32 %v597_v31, %v655_v25 }
  0x2b   :  { %v255_v19 = vshrl.u32 %v598_v33, %v670_v49  ;;  %v152_v22 = vmul.u32 %v150_v10, %v126_v37  ;;  %v153_v23 = vmul.u32 %v151_v11, %v126_v37  ;;  %v154_v26 = vmul.u32 %v150_v10, %v127_v42 }
  0x2c   :  { %v130_v16 = vmul.u32 %v128_v7, %v126_v37  ;;  %v131_v17 = vmul.u32 %v129_v9, %v126_v37  ;;  %v132_v18 = vmul.u32 %v128_v7, %v127_v42  ;;  %v133_v21 = vmul.u32 %v129_v9, %v127_v42 }
  0x2d   :  { %v155_v32 = vmul.u32 %v151_v11, %v127_v42  ;;  %v156_v36 = vshll.u32 %v153_v23, 16  ;;  %v157_v39 = vshrl.u32 %v153_v23, 16  ;;  %v158_v40 = vshll.u32 %v154_v26, 16 }
  0x2e   :  { %v134_v28 = vshll.u32 %v131_v17, 16  ;;  %v135_v29 = vshrl.u32 %v131_v17, 16  ;;  %v136_v30 = vshll.u32 %v132_v18, 16  ;;  %v137_v34 = vshrl.u32 %v132_v18, 16 }
  0x2f   :  { %v159_v41 = vshrl.u32 %v154_v26, 16  ;;  %v257_v43 = vshll.u32 %v598_v33, %v655_v25  ;;  %v601_v45 = vmov 0   ;;  %vm160_vm7 = vc.u32 %v152_v22, %v156_v36 }
  0x30   :  { %vm138_vm6 = vc.u32 %v130_v16, %v134_v28  ;;  %v140_v31 = vadd.s32 %v134_v28, %v130_v16  ;;  %v162_v37 = vadd.s32 %v156_v36, %v152_v22  ;;  %v258_v47 = vshrl.u32 %v599_v35, %v670_v49 }
  0x31   :  { %v139_v46 = vsel %vm138_vm6, 1, %v601_v45  ;;  %v161_v42 = vsel %vm160_vm7, 1, %v601_v45  ;;  %v260_v50 = vshll.u32 %v599_v35, %v655_v25  ;;  %v256_v33 = vor.u32 %v255_v19, %v254_v15 }
  0x32   :  { %v141_v48 = vadd.s32 %v139_v46, %v133_v21  ;;  %vm142_vm8 = vc.u32 %v140_v31, %v136_v30  ;;  %v163_v52 = vadd.s32 %v161_v42, %v155_v32  ;;  %vm164_vm9 = vc.u32 %v162_v37, %v158_v40 }
  0x33   :  { %v143_v51 = vsel %vm142_vm8, 1, %v601_v45  ;;  %v165_v54 = vsel %vm164_vm9, 1, %v601_v45  ;;  %v259_v56 = vor.u32 %v258_v47, %v257_v43  ;;  %v261_v57 = vshrl.u32 %v600_v44, %v670_v49 }
  0x34   :  { %v145_v53 = vadd.s32 %v143_v51, %v141_v48  ;;  %v723_v58 = vadd.s32 %v162_v37, %v158_v40  ;;  %v167_v59 = vadd.s32 %v165_v54, %v163_v52  ;;  %vm263_vm10 = vcmp.lt.s32.totalorder %v679_v55, 1 }
  0x35   :  { %vm265_vm11 = vcmp.lt.s32.totalorder %v679_v55, 3  ;;  %v262_v35 = vor.u32 %v261_v57, %v260_v50  ;;  %vm264_vm12 = vcmp.lt.s32.totalorder %v679_v55, 2  ;;  %vm266_vm13 = vcmp.lt.s32.totalorder %v679_v55, 4 }
  0x36   :  { %v146_v25 = vadd.s32 %v145_v53, %v135_v29  ;;  %v116_v60 = vsel %vm110_vm5, %v113_v0, %v115_v12  ;;  %v168_v61 = vadd.s32 %v167_v59, %v157_v39  ;;  %v271_v44 = vsel %vm263_vm10, %v704_v13, %v706_v14 }
  0x37   :  { %v272_v62 = vsel %vm266_vm13, %v259_v56, 920167782  ;;  %v275_v2 = vsel %vm263_vm10, %v706_v14, %v256_v33  ;;  %v280_v24 = vand.u32 65535, %v661_v38  ;;  %v276_v7 = vsel %vm266_vm13, %v262_v35, 1326507024 }
  0x38   :  { %v737_v63 = vadd.s32 %v146_v25, %v137_v34  ;;  %v273_v1 = vsel %vm265_vm11, %v256_v33, %v272_v62  ;;  %v169_v0 = vadd.s32 %v168_v61, %v159_v41  ;;  %v281_v9 = vshrl.u32 %v661_v38, 16 }
  0x39   :  { %v274_v3 = vsel %vm264_vm12, %v271_v44, %v273_v1  ;;  %v170_v10 = vmul.u32 %v651_v20, %v116_v60  ;;  %v277_v11 = vsel %vm265_vm11, %v259_v56, %v276_v7  ;;  %v247_v22 = vshrl.u32 %v595_v27, %v670_v49 }
  0x3a   :  { %vm172_vm14 = vc.u32 %v737_v63, %v723_v58  ;;  %v304_v12 = vand.u32 65535, %v274_v3  ;;  %v173_v15 = vadd.s32 1, %v169_v0  ;;  %v278_v16 = vsel %vm264_vm12, %v275_v2, %v277_v11 }
  0x3b   :  { %v305_v17 = vshrl.u32 %v274_v3, 16  ;;  %v282_v18 = vand.u32 65535, %v278_v16  ;;  %v283_v19 = vshrl.u32 %v278_v16, 16  ;;  %v268_v39 = vsel %vm266_vm13, %v256_v33, 2102212464 }
  0x3c   :  { %v174_v21 = vsel %vm172_vm14, %v173_v15, %v169_v0  ;;  %v308_v20 = vmul.u32 %v304_v12, %v281_v9  ;;  %v306_v30 = vmul.u32 %v304_v12, %v280_v24  ;;  %v267_v41 = vsel %vm263_vm10, %v247_v22, %v704_v13 }
  0x3d   :  { %v307_v23 = vmul.u32 %v305_v17, %v280_v24  ;;  %v175_v26 = vadd.s32 %v174_v21, %v170_v10  ;;  %v284_v28 = vmul.u32 %v282_v18, %v280_v24  ;;  %v285_v29 = vmul.u32 %v283_v19, %v280_v24 }
  0x3e   :  { %v286_v32 = vmul.u32 %v282_v18, %v281_v9  ;;  %v287_v40 = vmul.u32 %v283_v19, %v281_v9  ;;  %v309_v27 = vmul.u32 %v305_v17, %v281_v9  ;;  %v312_v49 = vshll.u32 %v308_v20, 16 }
  0x3f   :  { %v310_v34 = vshll.u32 %v307_v23, 16  ;;  %v176_v36 = vadd.s32 536870912, %v175_v26  ;;  %v288_v31 = vshll.u32 %v285_v29, 16  ;;  %v269_v47 = vsel %vm265_vm11, %v706_v14, %v268_v39 }
  0x40   :  { %v290_v43 = vshll.u32 %v286_v32, 16  ;;  %v289_v13 = vshrl.u32 %v285_v29, 16  ;;  %v311_v53 = vshrl.u32 %v307_v23, 16  ;;  %v291_v57 = vshrl.u32 %v286_v32, 16 }
  0x41   :  { %v764_v46 = vshrl.u32 %v176_v36, 30  ;;  %vm292_vm15 = vc.u32 %v284_v28, %v288_v31  ;;  %v294_v37 = vadd.s32 %v288_v31, %v284_v28  ;;  %vm314_vm0 = vc.u32 %v306_v30, %v310_v34  ;;  %v71_v31 = vld [vmem:[#allocation7] sm:$0x3] }
  0x42   :  { %v293_v48 = vsel %vm292_vm15, 1, %v601_v45  ;;  %v315_v42 = vsel %vm314_vm0, 1, %v601_v45  ;;  %v316_v50 = vadd.s32 %v310_v34, %v306_v30  ;;  %v313_v25 = vshrl.u32 %v308_v20, 16 }
  0x43   :  { %v178_v51 = vshll.u32 %v764_v46, 30  ;;  %v295_v52 = vadd.s32 %v293_v48, %v287_v40  ;;  %vm296_vm1 = vc.u32 %v294_v37, %v290_v43  ;;  %v317_v54 = vadd.s32 %v315_v42, %v309_v27 }
  0x44   :  { %v297_v33 = vsel %vm296_vm1, 1, %v601_v45  ;;  %vm318_vm2 = vc.u32 %v316_v50, %v312_v49  ;;  %v320_v44 = vadd.s32 %v316_v50, %v312_v49  ;;  %v270_v62 = vsel %vm264_vm12, %v267_v41, %v269_v47  ;;  %v72_v41 = vld [vmem:[#allocation7 + $0x2] sm:$0x3] }
  0x45   :  { %v179_v56 = vsub.s32 %v175_v26, %v178_v51  ;;  %v299_v59 = vadd.s32 %v297_v33, %v295_v52  ;;  %v319_v14 = vsel %vm318_vm2, 1, %v601_v45  ;;  %v324_v7 = vmul.u32 %v661_v38, %v270_v62 }
  0x46   :  { %v321_v35 = vadd.s32 %v319_v14, %v317_v54  ;;  %v171_v11 = vadd.s32 %v723_v58, %v737_v63  ;;  %vm79_vm7 = vcmp.lt.s32.totalorder %v639_v4, 0  ;;  %vm785_vm8 = vcmp.le.f32.partialorder %v77_v6, 0.7853982 }
  0x47   :  { %vm180_vm3 = vcmp.lt.s32.totalorder %v179_v56, 0  ;;  %v181_v60 = vsub.s32 0, %v179_v56  ;;  %v300_v61 = vadd.s32 %v299_v59, %v289_v13  ;;  %vm73_vm10 = vnez %v71_v31 }
  0x48   :  { %v322_v1 = vadd.s32 %v321_v35, %v311_v53  ;;  %vm74_vm11 = vnez %v72_v41  ;;  %vm233_vm14 = vcmp.lt.s32.totalorder %v641_v5, 0  ;;  %vm815_vm15 = vcmp.le.f32.partialorder %v231_v8, 0.7853982 }
  0x49   :  { %v182_v2 = vsel %vm180_vm3, %v181_v60, %v179_v56  ;;  %v301_v24 = vadd.s32 %v300_v61, %v291_v57  ;;  %v386_v57 = vsel %vm74_vm11, 16843009, %v601_v45  ;;  %vm220_vm3 = vweird.f32 %v639_v4 }
  0x4a   :  { %v183_v0 = vclz %v182_v2  ;;  %v323_v3 = vadd.s32 %v322_v1, %v313_v25  ;;  %v388_v60 = vunpack.c.0.s8 %v386_v57 }
  0x4b   :  { %vm326_vm4 = vc.u32 %v301_v24, %v320_v44  ;;  %v325_v47 = vadd.s32 %v320_v44, %v301_v24  ;;  %v603_v24 = vmov 0.0  }
  0x4c   :  { %v436_v9 = vadd.s32 4294967294, %v183_v0  ;;  %v327_v10 = vadd.s32 1, %v323_v3  ;;  %vm803_vm13 = vcmp.ne.s32.totalorder %v388_v60, 0 }
  0x4e   :  { %vm437_vm5 = vcmp.lt.s32.totalorder %v436_v9, 0  ;;  %v328_v12 = vsel %vm326_vm4, %v327_v10, %v323_v3  ;;  %v442_v3 = vsel %vm803_vm13, 1.0, %v603_v24  ;;  %v201_v10 = vsub.s32 4, %v764_v46 }
  0x4f   :  { %v186_v15 = vsel %vm437_vm5, 0, %v436_v9  ;;  %v329_v16 = vadd.s32 %v328_v12, %v324_v7 }
  0x50   :  { %v187_v17 = vsub.s32 32, %v186_v15  ;;  %v188_v55 = vshll.u32 %v179_v56, %v186_v15  ;;  %v191_v18 = vsub.s32 4294967266, %v186_v15  ;;  %v385_v56 = vsel %vm73_vm10, 16843009, %v601_v45 }
  0x51   :  { %v330_v19 = vadd.s32 536870912, %v329_v16  ;;  %v387_v25 = vunpack.c.0.s8 %v385_v56 }
  0x52   :  { %v189_v21 = vshrl.u32 %v171_v11, %v187_v17  ;;  %v192_v22 = vadd.s32 127, %v191_v18 }
  0x53   :  { %v779_v23 = vshrl.u32 %v330_v19, 30  ;;  %vm796_vm12 = vcmp.ne.s32.totalorder %v387_v25, 0 }
  0x54   :  { %v190_v20 = vor.u32 %v189_v21, %v188_v55  ;;  %v193_v38 = vshll.u32 %v192_v22, 23  ;;  %v441_v0 = vsel %vm796_vm12, 1.0, %v603_v24  ;;  %v202_v55 = vsel %vm79_vm7, %v201_v10, %v764_v46 }
  0x55   :  { %v332_v26 = vshll.u32 %v779_v23, 30  ;;  %v399_v9 = vadd.f32 %v442_v3, %v441_v0  ;;  %v355_v18 = vsub.s32 4, %v779_v23  ;;  %v204_v8 = vsel %vm785_vm8, 0, %v202_v55 }
  0x56   :  { %v194_v28 = vor.u32 4788187, %v193_v38  ;;  %v197_v29 = vcvt.s32.f32 %v190_v20  ;;  %v221_v46 = vand.u32 3, %v204_v8 }
  0x57   :  { %v333_v30 = vsub.s32 %v329_v16, %v332_v26  ;;  %400 = vst [vmem:[#allocation9] sm:$0xff] %v399_v9  ;;  %v356_v26 = vsel %vm233_vm14, %v355_v18, %v779_v23 }
  0x58   :  { %v195_v58 = vand.u32 2147483647, %v194_v28  ;;  %422 = dma.vmem_to_hbm [thread:$0]  %s418_s2, 128, %s420_s9, [#allocation10]   ;;  %vm223_vm0 = vcmp.eq.s32.totalorder %v221_v46, 0  ;;  %vm226_vm1 = vcmp.eq.s32.totalorder %v221_v46, 2 }
  0x59   :  { %vm334_vm6 = vcmp.lt.s32.totalorder %v333_v30, 0  ;;  %v335_v63 = vsub.s32 0, %v333_v30  ;;  %vm222_vm2 = vcmp.lt.s32.totalorder %v221_v46, 2 }
  0x5a   :  { %v198_v32 = vmul.f32 %v197_v29, %v195_v58 }
  0x5b   :  { %v336_v34 = vsel %vm334_vm6, %v335_v63, %v333_v30 }
  0x5c   :  { %v199_v39 = vxor.u32 2147483648, %v198_v32  ;;  %v337_v40 = vclz %v336_v34  ;;  %v358_v34 = vsel %vm815_vm15, 0, %v356_v26 }
  0x5d   :  { %v375_v23 = vand.u32 3, %v358_v34 }
  0x5e   :  { %v200_v43 = vsel %vm79_vm7, %v199_v39, %v198_v32  ;;  %v439_v27 = vadd.s32 4294967294, %v337_v40  ;;  %vm374_vm7 = vweird.f32 %v641_v5 }
  0x5f   :  { %v203_v49 = vsel %vm785_vm8, %v639_v4, %v200_v43  ;;  %vm380_vm4 = vcmp.eq.s32.totalorder %v375_v23, 2  ;;  %vm377_vm5 = vcmp.eq.s32.totalorder %v375_v23, 0  ;;  %vm376_vm6 = vcmp.lt.s32.totalorder %v375_v23, 2 }
  0x60   :  { %v205_v37 = vmul.f32 %v203_v49, %v203_v49  ;;  %vm440_vm9 = vcmp.lt.s32.totalorder %v439_v27, 0 }
  0x61   :  { %v340_v6 = vsel %vm440_vm9, 0, %v439_v27 }
  0x62   :  { %v206_v48 = vmul.f32 -0.001358992, %v205_v37  ;;  %v213_v42 = vmul.f32 -0.00019511016, %v205_v37  ;;  %v341_v50 = vsub.s32 32, %v340_v6  ;;  %v342_v51 = vshll.u32 %v333_v30, %v340_v6 }
  0x63   :  { %v345_v13 = vsub.s32 4294967266, %v340_v6 }
  0x64   :  { %v207_v52 = vadd.f32 0.041655596, %v206_v48  ;;  %v214_v33 = vadd.f32 0.008332121, %v213_v42  ;;  %v343_v53 = vshrl.u32 %v325_v47, %v341_v50 }
  0x65   :  { %v346_v54 = vadd.s32 127, %v345_v13 }
  0x66   :  { %v215_v59 = vmul.f32 %v214_v33, %v205_v37  ;;  %v344_v14 = vor.u32 %v343_v53, %v342_v51  ;;  %v208_v61 = vmul.f32 %v207_v52, %v205_v37 }
  0x67   :  { %v347_v35 = vshll.u32 %v346_v54, 23 }
  0x68   :  { %v216_v44 = vadd.f32 -0.16666654, %v215_v59  ;;  %v351_v2 = vcvt.s32.f32 %v344_v14  ;;  %v209_v11 = vadd.f32 -0.4999988, %v208_v61 }
  0x69   :  { %v348_v1 = vor.u32 4788187, %v347_v35 }
  0x6a   :  { %v217_v12 = vmul.f32 %v216_v44, %v205_v37  ;;  %v210_v19 = vmul.f32 %v209_v11, %v205_v37 }
  0x6b   :  { %v349_v7 = vand.u32 2147483647, %v348_v1 }
  0x6c   :  { %v218_v21 = vadd.f32 1.0, %v217_v12  ;;  %v211_v28 = vadd.f32 1.0, %v210_v19 }
  0x6d   :  { %v352_v15 = vmul.f32 %v351_v2, %v349_v7 }
  0x6e   :  { %v219_v29 = vmul.f32 %v218_v21, %v203_v49  ;;  %v227_v40 = vxor.u32 2147483648, %v211_v28 }
  0x6f   :  { %v353_v17 = vxor.u32 2147483648, %v352_v15 }
  0x70   :  { %v224_v39 = vxor.u32 2147483648, %v219_v29  ;;  %v228_v49 = vsel %vm226_vm1, %v227_v40, %v219_v29 }
  0x71   :  { %v354_v22 = vsel %vm233_vm14, %v353_v17, %v352_v15 }
  0x72   :  { %v357_v20 = vsel %vm815_vm15, %v641_v5, %v354_v22  ;;  %v225_v27 = vsel %vm223_vm0, %v211_v28, %v224_v39 }
  0x73   :  { %v359_v38 = vmul.f32 %v357_v20, %v357_v20  ;;  %v229_v42 = vsel %vm222_vm2, %v225_v27, %v228_v49 }
  0x74   :  { %v230_v13 = vsel %vm220_vm3, nan, %v229_v42 }
  0x75   :  { %v360_v30 = vmul.f32 -0.001358992, %v359_v38  ;;  %v367_v58 = vmul.f32 -0.00019511016, %v359_v38  ;;  %v391_v56 = vsel %vm796_vm12, %v230_v13, 0.0 }
  0x77   :  { %v361_v63 = vadd.f32 0.041655596, %v360_v30  ;;  %v368_v32 = vadd.f32 0.008332121, %v367_v58 }
  0x79   :  { %v362_v31 = vmul.f32 %v361_v63, %v359_v38  ;;  %v369_v41 = vmul.f32 %v368_v32, %v359_v38 }
  0x7b   :  { %v363_v36 = vadd.f32 -0.4999988, %v362_v31  ;;  %v370_v43 = vadd.f32 -0.16666654, %v369_v41 }
  0x7d   :  { %v364_v37 = vmul.f32 %v363_v36, %v359_v38  ;;  %v371_v47 = vmul.f32 %v370_v43, %v359_v38 }
  0x7f   :  { %v365_v6 = vadd.f32 1.0, %v364_v37  ;;  %v372_v48 = vadd.f32 1.0, %v371_v47 }
  0x81   :  { %v373_v50 = vmul.f32 %v372_v48, %v357_v20  ;;  %v381_v51 = vxor.u32 2147483648, %v365_v6 }
  0x83   :  { %v378_v52 = vxor.u32 2147483648, %v373_v50  ;;  %v382_v33 = vsel %vm380_vm4, %v381_v51, %v373_v50 }
  0x85   :  { %v379_v53 = vsel %vm377_vm5, %v365_v6, %v378_v52 }
  0x86   :  { %v383_v54 = vsel %vm376_vm6, %v379_v53, %v382_v33 }
  0x87   :  { %v384_v4 = vsel %vm374_vm7, nan, %v383_v54 }
  0x88   :  { %v392_v57 = vsel %vm803_vm13, %v384_v4, 0.0 }
  0x89   :  { %v397_v59 = vadd.f32 %v392_v57, %v391_v56 }
  0x8b   :  { %398 = vst [vmem:[#allocation8] sm:$0xff] %v397_v59 }
  0x8c   :  { %411 = dma.vmem_to_hbm [thread:$0]  %s407_s10, 128, %s409_s13, [#allocation4]  }
  0x8d   :  { %584 = dma.done.wait [#allocation4], 128  }
  0x8e   :  { %585 = vsyncadd [#allocation4], 4294967168 }
  0x8f   :  { %586 = dma.done.wait [#allocation10], 128  }
  0x90   :  { %587 = vsyncadd [#allocation10], 4294967168 }
  0x91   :  { %431 = vsyncpa [#allocation3], 1 }
  0x92   :  { %432 = vsyncpa [#allocation6], 1 }
  0x93   :  { %433 = vsyncpa [#allocation4], 1 }
  0x94   :  { %434 = vsyncpa [#allocation10], 1 }

</bundles_post_ra>
